<compile_context>
chip_gen: v7x
topology: tpu7x:2x2x1
jax: 0.10.0
libtpu: 0.0.40
codegen_flags: <defaults>
</compile_context>

<pallas_src>
import jax
import jax.numpy as jnp
from jax.experimental import pallas as pl
from jax.experimental.pallas import tpu as pltpu

LANE = 128
_VMEM_LIMIT = 48 * 1024 * 1024          # headroom below v7x's 64 MiB physical VMEM
_FUSED_VMEM_BUDGET = 24 * 1024 * 1024   # budget for the resident (adj/x in VMEM) path


def _round_up(v, m):
    return (v + m - 1) // m * m


def _pad2(a, rows, cols):
    return jnp.pad(a, ((0, rows - a.shape[0]), (0, cols - a.shape[1])))


# ---------------------------------------------------------------------------
# Kernels
# ---------------------------------------------------------------------------
def _fused_gcngc_kernel(x_ref, adj_ref, w_ref, b_ref, ow_ref, ob_ref,
                        o_ref, h_ref):
    """All GCN layers + sum-readout + output linear, in one kernel.

    Grid axis 0 = layer index ("arbitrary": state carried in h_ref scratch).
    x / adj / head weights have constant block index -> DMA'd once, resident.
    Per-layer W/b blocks change per step -> auto double-buffered (next layer's
    weights prefetched while the current layer computes).
    """
    l = pl.program_id(0)
    cdt = h_ref.dtype

    @pl.when(l == 0)
    def _init():
        h_ref[...] = x_ref[...]

    # h = x @ W_l + b_l  (bias BEFORE aggregation, matching the module), f32 acc.
    h = jnp.dot(h_ref[...], w_ref[0],
                preferred_element_type=jnp.float32) + b_ref[0]
    # y = adj @ h ; relu.  Padded adj rows/cols are zero, so padded node rows
    # of h stay exactly zero after aggregation and never leak into the readout.
    y = jnp.dot(adj_ref[...], h.astype(cdt),
                preferred_element_type=jnp.float32)
    h_ref[...] = jnp.maximum(y, 0.0).astype(cdt)

    @pl.when(l == pl.num_programs(0) - 1)
    def _readout_and_head():
        # Graph readout as an MXU matmul (ones @ h) instead of a cross-sublane
        # XLU reduction, fused here so x never returns to HBM.
        ones = jnp.ones((1, h_ref.shape[0]), cdt)
        pooled = jnp.dot(ones, h_ref[...], preferred_element_type=jnp.float32)
        logits = jnp.dot(pooled.astype(cdt), ow_ref[...],
                         preferred_element_type=jnp.float32) + ob_ref[...]
        o_ref[...] = logits.astype(o_ref.dtype)


def _gcn_layer_tiled_kernel(adj_ref, x_ref, w_ref, b_ref, o_ref, acc_ref):
    """One GCN layer tiled over (output row tile i, reduction tile k).

    acc[i] += adj[i,k] @ (x[k] @ W + b), summed over k  ==  adj @ (x W + b):
    the per-k bias rows aggregate through adj's row sums, preserving semantics.
    """
    k = pl.program_id(1)

    @pl.when(k == 0)
    def _zero():
        acc_ref[...] = jnp.zeros_like(acc_ref)

    cdt = x_ref.dtype
    h = jnp.dot(x_ref[...], w_ref[...],
                preferred_element_type=jnp.float32) + b_ref[...]
    acc_ref[...] += jnp.dot(adj_ref[...], h.astype(cdt),
                            preferred_element_type=jnp.float32)

    @pl.when(k == pl.num_programs(1) - 1)
    def _finalize():
        o_ref[...] = jnp.maximum(acc_ref[...], 0.0).astype(o_ref.dtype)


def _readout_head_tiled_kernel(x_ref, ow_ref, ob_ref, o_ref, acc_ref):
    """Sum-over-nodes readout (accumulated across row tiles) + output linear."""
    i = pl.program_id(0)

    @pl.when(i == 0)
    def _zero():
        acc_ref[...] = jnp.zeros_like(acc_ref)

    ones = jnp.ones((1, x_ref.shape[0]), x_ref.dtype)
    acc_ref[...] += jnp.dot(ones, x_ref[...], preferred_element_type=jnp.float32)

    @pl.when(i == pl.num_programs(0) - 1)
    def _finalize():
        pooled = acc_ref[...].astype(ow_ref.dtype)
        o_ref[...] = (jnp.dot(pooled, ow_ref[...],
                              preferred_element_type=jnp.float32)
                      + ob_ref[...]).astype(o_ref.dtype)


# ---------------------------------------------------------------------------
# pallas_call wrappers
# ---------------------------------------------------------------------------
def _gcngc_fused(x_p, adj_p, w_stack, b_stack, ow_p, ob_p):
    n_layers, fpad, _ = w_stack.shape
    npad = x_p.shape[0]
    opad = ow_p.shape[1]
    csize = jnp.dtype(x_p.dtype).itemsize

    cost = pl.CostEstimate(
        flops=int(2 * n_layers * (npad * fpad * fpad + npad * npad * fpad)
                  + 2 * (npad * fpad + fpad * opad)),
        transcendentals=0,
        bytes_accessed=int(csize * (npad * npad + npad * fpad
                                    + n_layers * fpad * fpad + fpad * opad)
                           + 4 * (n_layers * fpad + 2 * opad)))

    return pl.pallas_call(
        _fused_gcngc_kernel,
        out_shape=jax.ShapeDtypeStruct((1, opad), jnp.float32),
        grid=(n_layers,),
        in_specs=[
            pl.BlockSpec((npad, fpad), lambda l: (0, 0)),        # x (resident)
            pl.BlockSpec((npad, npad), lambda l: (0, 0)),        # adj (resident)
            pl.BlockSpec((1, fpad, fpad), lambda l: (l, 0, 0)),  # W_l (streamed)
            pl.BlockSpec((1, 1, fpad), lambda l: (l, 0, 0)),     # b_l (streamed)
            pl.BlockSpec((fpad, opad), lambda l: (0, 0)),        # head W (resident)
            pl.BlockSpec((1, opad), lambda l: (0, 0)),           # head b (resident)
        ],
        out_specs=pl.BlockSpec((1, opad), lambda l: (0, 0)),
        scratch_shapes=[pltpu.VMEM((npad, fpad), x_p.dtype)],
        compiler_params=pltpu.CompilerParams(
            dimension_semantics=("arbitrary",),
            vmem_limit_bytes=_VMEM_LIMIT),
        cost_estimate=cost,
    )(x_p, adj_p, w_stack, b_stack, ow_p, ob_p)


def _gcn_layer_tiled(x_p, adj_p, w_p, b_p, *, tile_m, tile_k):
    npad, finp = x_p.shape
    foutp = w_p.shape[1]
    gi = npad // tile_m
    csize = jnp.dtype(x_p.dtype).itemsize

    cost = pl.CostEstimate(
        flops=int(2 * npad * npad * foutp + 2 * gi * npad * finp * foutp),
        transcendentals=0,
        bytes_accessed=int(csize * (npad * npad + gi * npad * finp
                                    + finp * foutp + npad * foutp)
                           + 4 * foutp))

    return pl.pallas_call(
        _gcn_layer_tiled_kernel,
        out_shape=jax.ShapeDtypeStruct((npad, foutp), x_p.dtype),
        grid=(npad // tile_m, npad // tile_k),
        in_specs=[
            pl.BlockSpec((tile_m, tile_k), lambda i, k: (i, k)),  # adj tile
            pl.BlockSpec((tile_k, finp), lambda i, k: (k, 0)),    # x k-slab
            pl.BlockSpec((finp, foutp), lambda i, k: (0, 0)),     # W (resident)
            pl.BlockSpec((1, foutp), lambda i, k: (0, 0)),        # b (resident)
        ],
        out_specs=pl.BlockSpec((tile_m, foutp), lambda i, k: (i, 0)),
        scratch_shapes=[pltpu.VMEM((tile_m, foutp), jnp.float32)],
        compiler_params=pltpu.CompilerParams(
            dimension_semantics=("parallel", "arbitrary"),
            vmem_limit_bytes=_VMEM_LIMIT),
        cost_estimate=cost,
    )(adj_p, x_p, w_p, b_p)


def _readout_head_tiled(h_p, ow_p, ob_p, *, tile_m):
    npad, fpad = h_p.shape
    opad = ow_p.shape[1]
    csize = jnp.dtype(h_p.dtype).itemsize

    cost = pl.CostEstimate(
        flops=int(2 * npad * fpad + 2 * fpad * opad),
        transcendentals=0,
        bytes_accessed=int(csize * (npad * fpad + fpad * opad) + 4 * 2 * opad))

    return pl.pallas_call(
        _readout_head_tiled_kernel,
        out_shape=jax.ShapeDtypeStruct((1, opad), jnp.float32),
        grid=(npad // tile_m,),
        in_specs=[
            pl.BlockSpec((tile_m, fpad), lambda i: (i, 0)),
            pl.BlockSpec((fpad, opad), lambda i: (0, 0)),
            pl.BlockSpec((1, opad), lambda i: (0, 0)),
        ],
        out_specs=pl.BlockSpec((1, opad), lambda i: (0, 0)),
        scratch_shapes=[pltpu.VMEM((1, fpad), jnp.float32)],
        compiler_params=pltpu.CompilerParams(
            dimension_semantics=("arbitrary",),
            vmem_limit_bytes=_VMEM_LIMIT),
        cost_estimate=cost,
    )(h_p, ow_p, ob_p)


# ---------------------------------------------------------------------------
# Forward
# ---------------------------------------------------------------------------
def _pick_tile(npad, requested=None):
    if requested is not None:
        assert npad % requested == 0, (npad, requested)
        return requested
    for t in (512, 256, 128):
        if npad % t == 0:
            return t
    return npad


def gcngc_forward(x, adj, params, *, compute_dtype=jnp.float32,
                  force_tiled=False, tile_m=None, tile_k=None):
    """Full GCNGC forward (batch_index=None path)."""
    # TODO(synk): batch_index scatter_add_ graph-batching readout not implemented
    # (only the batch_index=None / single-graph readout path).
    n, f_in = x.shape
    layer_ws = params["gcn_layers"]
    out_w_t, out_b = params["out_w_t"], params["out_b"]
    out_f = out_w_t.shape[1]
    n_layers = len(layer_ws)

    dims = [f_in] + [w.shape[1] for (w, _) in layer_ws]
    fpad = _round_up(max(dims), LANE)
    npad = _round_up(n, LANE)
    opad = _round_up(out_f, LANE)

    cdt = jnp.dtype(compute_dtype)
    # Pad once in the wrapper: lane-dense matmuls & stores.  Padded weight/bias
    # columns are zero and adj's padded rows/cols are zero, so padded lanes/rows
    # never leak into relu / readout; logits are sliced back at the end.
    x_p = _pad2(x, npad, fpad).astype(cdt)
    adj_p = _pad2(adj, npad, npad).astype(cdt)
    w_stack = jnp.stack([_pad2(w, fpad, fpad) for (w, _) in layer_ws]).astype(cdt)
    b_stack = jnp.stack([_pad2(b, 1, fpad) for (_, b) in layer_ws]).astype(jnp.float32)
    ow_p = _pad2(out_w_t, fpad, opad).astype(cdt)
    ob_p = _pad2(out_b, 1, opad).astype(jnp.float32)

    csize = cdt.itemsize
    fused_bytes = (csize * (npad * npad + 2 * npad * fpad
                            + 2 * fpad * fpad + fpad * opad)
                   + 4 * (2 * fpad + 2 * opad))
    use_fused = (not force_tiled) and fused_bytes <= _FUSED_VMEM_BUDGET

    if use_fused:
        out = _gcngc_fused(x_p, adj_p, w_stack, b_stack, ow_p, ob_p)
    else:
        tm = _pick_tile(npad, tile_m)
        tk = _pick_tile(npad, tile_k)
        h = x_p
        for l in range(n_layers):
            h = _gcn_layer_tiled(h, adj_p, w_stack[l], b_stack[l],
                                 tile_m=tm, tile_k=tk)
        out = _readout_head_tiled(h, ow_p, ob_p, tile_m=tm)

    return out[0, :out_f]


# ---------------------------------------------------------------------------
# Deterministic parameter construction (synthetic, mirrors module __init__)
# ---------------------------------------------------------------------------
def make_params(key, in_features, hidden_features, out_features):
    """hidden_features: list of hidden dims (len == n_layers - 1)."""
    dims = [in_features] + list(hidden_features)
    params = {"gcn_layers": []}
    gain = jnp.sqrt(2.0)  # nn.init.calculate_gain('relu')
    for i in range(len(dims) - 1):
        key, kw, kb = jax.random.split(key, 3)
        fin, fout = dims[i], dims[i + 1]
        std = gain * jnp.sqrt(2.0 / (fin + fout))   # xavier_normal_, stored as [fin,fout]
        w_t = std * jax.random.normal(kw, (fin, fout), jnp.float32)
        bound = 1.0 / jnp.sqrt(fin)
        b = jax.random.uniform(kb, (1, fout), jnp.float32, -bound, bound)
        params["gcn_layers"].append((w_t, b))
    key, kw, kb = jax.random.split(key, 3)
    fhid = dims[-1]
    bound = 1.0 / jnp.sqrt(fhid)
    params["out_w_t"] = jax.random.uniform(kw, (fhid, out_features), jnp.float32,
                                           -bound, bound)
    params["out_b"] = jax.random.uniform(kb, (1, out_features), jnp.float32,
                                         -bound, bound)
    return params


def make_normalized_adj(key, n):
    """Dense symmetric GCN-normalized adjacency: D^-1/2 (A + I) D^-1/2."""
    a = (jax.random.uniform(key, (n, n)) < 0.25).astype(jnp.float32)
    a = jnp.maximum(a, a.T)
    a = a + jnp.eye(n, dtype=jnp.float32)
    a = jnp.minimum(a, 1.0)
    deg = jnp.sum(a, axis=1)
    d_inv_sqrt = 1.0 / jnp.sqrt(deg)
    return a * d_inv_sqrt[:, None] * d_inv_sqrt[None, :]


# ---------------------------------------------------------------------------
# Pure-JAX reference for correctness check
# ---------------------------------------------------------------------------
def gcngc_reference(x, adj, params):
    for (w_t, b) in params["gcn_layers"]:
        x = jnp.maximum(adj @ (x @ w_t + b), 0.0)
    pooled = jnp.sum(x, axis=0)
    return pooled @ params["out_w_t"] + params["out_b"][0]


if __name__ == "__main__":
    key = jax.random.PRNGKey(0)

    # --- Test 1: small graph -> fully fused single-kernel path (f32) --------
    N, IN_F, HID_F, OUT_F = 16, 8, [32, 32], 4
    k_x, k_adj, k_p = jax.random.split(jax.random.fold_in(key, 1), 3)
    x = jax.random.normal(k_x, (N, IN_F), jnp.float32)
    adj = make_normalized_adj(k_adj, N)
    params = make_params(k_p, IN_F, HID_F, OUT_F)

    out = jax.block_until_ready(gcngc_forward(x, adj, params))
    ref = gcngc_reference(x, adj, params)
    assert out.shape == (OUT_F,)
    assert jnp.allclose(out, ref, atol=1e-3, rtol=1e-3), (out, ref)

    # --- Test 2: larger graph -> tiled (row x k) per-layer path (f32) -------
    N2, IN2, HID2, OUT2 = 256, 8, [64, 64], 4
    k_x2, k_adj2, k_p2 = jax.random.split(jax.random.fold_in(key, 2), 3)
    x2 = jax.random.normal(k_x2, (N2, IN2), jnp.float32)
    adj2 = make_normalized_adj(k_adj2, N2)
    params2 = make_params(k_p2, IN2, HID2, OUT2)

    out2 = jax.block_until_ready(
        gcngc_forward(x2, adj2, params2, force_tiled=True, tile_m=128, tile_k=128))
    ref2 = gcngc_reference(x2, adj2, params2)
    assert out2.shape == (OUT2,)
    assert jnp.allclose(out2, ref2, atol=3e-3, rtol=3e-3), (out2, ref2)

    # --- Test 3: fused path with bf16 compute (f32 MXU accumulation) --------
    out3 = jax.block_until_ready(
        gcngc_forward(x, adj, params, compute_dtype=jnp.bfloat16))
    assert out3.shape == (OUT_F,)
    assert bool(jnp.isfinite(out3).all())
    rel = float(jnp.max(jnp.abs(out3 - ref)) / (jnp.max(jnp.abs(ref)) + 1e-6))
    assert rel < 1e-1, rel   # coarse sanity check for the bf16 compute path

    print("KERNEL_OK")
</pallas_src>

<mosaic_0001>
module attributes {stable_mosaic.version = 11 : i64} {
  func.func @_fused_gcngc_kernel(%arg0: i32, %arg1: memref<128x128xf32, #tpu.memory_space<vmem>>, %arg2: memref<128x128xf32, #tpu.memory_space<vmem>>, %arg3: memref<1x128x128xf32, #tpu.memory_space<vmem>>, %arg4: memref<1x1x128xf32, #tpu.memory_space<vmem>>, %arg5: memref<128x128xf32, #tpu.memory_space<vmem>>, %arg6: memref<1x128xf32, #tpu.memory_space<vmem>>, %arg7: memref<1x128xf32, #tpu.memory_space<vmem>>, %arg8: memref<128x128xf32, #tpu.memory_space<vmem>>) attributes {dimension_semantics = [#tpu.dimension_semantics<arbitrary>], iteration_bounds = array<i64: 2>, scalar_prefetch = 0 : i64, scratch_operands = 1 : i64, tpu.core_type = #tpu.core_type<tc>, window_params = [{pipeline_mode = #tpu.pipeline_mode<synchronous>, transform_indices = @transform_0, window_bounds = array<i64: 128, 128>}, {pipeline_mode = #tpu.pipeline_mode<synchronous>, transform_indices = @transform_1, window_bounds = array<i64: 128, 128>}, {transform_indices = @transform_2, window_bounds = array<i64: 1, 128, 128>}, {transform_indices = @transform_3, window_bounds = array<i64: 1, 1, 128>}, {pipeline_mode = #tpu.pipeline_mode<synchronous>, transform_indices = @transform_4, window_bounds = array<i64: 128, 128>}, {pipeline_mode = #tpu.pipeline_mode<synchronous>, transform_indices = @transform_5, window_bounds = array<i64: 1, 128>}, {pipeline_mode = #tpu.pipeline_mode<synchronous>, transform_indices = @transform_6, window_bounds = array<i64: 1, 128>}]} {
    %c0_i32 = arith.constant 0 : i32
    %0 = arith.cmpi eq, %arg0, %c0_i32 : i32
    %1 = arith.extui %0 : i1 to i32
    %c0_i32_0 = arith.constant 0 : i32
    %2 = arith.cmpi ne, %1, %c0_i32_0 : i32
    scf.if %2 {
      %c0_15 = arith.constant 0 : index
      %c0_16 = arith.constant 0 : index
      %19 = vector.load %arg1[%c0_15, %c0_16] : memref<128x128xf32, #tpu.memory_space<vmem>>, vector<128x128xf32>
      %c0_17 = arith.constant 0 : index
      %c0_18 = arith.constant 0 : index
      %20 = vector.load %arg8[%c0_17, %c0_18] : memref<128x128xf32, #tpu.memory_space<vmem>>, vector<128x128xf32>
      tpu.vector_store %arg8[%c0_17, %c0_18], %19 {strides = array<i32>} : memref<128x128xf32, #tpu.memory_space<vmem>>, vector<128x128xf32>,
    } else {
    }
    %c0 = arith.constant 0 : index
    %c0_1 = arith.constant 0 : index
    %3 = vector.load %arg8[%c0, %c0_1] : memref<128x128xf32, #tpu.memory_space<vmem>>, vector<128x128xf32>
    %c0_2 = arith.constant 0 : index
    %c0_3 = arith.constant 0 : index
    %c0_4 = arith.constant 0 : index
    %4 = vector.load %arg3[%c0_2, %c0_3, %c0_4] : memref<1x128x128xf32, #tpu.memory_space<vmem>>, vector<1x128x128xf32>
    %5 = vector.shape_cast %4 : vector<1x128x128xf32> to vector<128x128xf32>
    %cst = arith.constant dense<0.000000e+00> : vector<128x128xf32>
    %6 = tpu.matmul %3, %5, %cst {dimension_numbers = #tpu.dot_dimension_numbers<[1], [0], [0], [1], [0, 0, 1, 1], [], []>} : vector<128x128xf32>, vector<128x128xf32>, vector<128x128xf32> -> vector<128x128xf32>
    %c0_5 = arith.constant 0 : index
    %c0_6 = arith.constant 0 : index
    %c0_7 = arith.constant 0 : index
    %7 = vector.load %arg4[%c0_5, %c0_6, %c0_7] : memref<1x1x128xf32, #tpu.memory_space<vmem>>, vector<1x1x128xf32>
    %8 = vector.shape_cast %7 : vector<1x1x128xf32> to vector<1x128xf32>
    %9 = vector.broadcast %8 : vector<1x128xf32> to vector<128x128xf32>
    %10 = arith.addf %6, %9 : vector<128x128xf32>
    %c0_8 = arith.constant 0 : index
    %c0_9 = arith.constant 0 : index
    %11 = vector.load %arg2[%c0_8, %c0_9] : memref<128x128xf32, #tpu.memory_space<vmem>>, vector<128x128xf32>
    %cst_10 = arith.constant dense<0.000000e+00> : vector<128x128xf32>
    %12 = tpu.matmul %11, %10, %cst_10 {dimension_numbers = #tpu.dot_dimension_numbers<[1], [0], [0], [1], [0, 0, 1, 1], [], []>} : vector<128x128xf32>, vector<128x128xf32>, vector<128x128xf32> -> vector<128x128xf32>
    %cst_11 = arith.constant 0.000000e+00 : f32
    %13 = vector.broadcast %cst_11 : f32 to vector<128x128xf32>
    %14 = arith.maximumf %12, %13 : vector<128x128xf32>
    %c0_12 = arith.constant 0 : index
    %c0_13 = arith.constant 0 : index
    %15 = vector.load %arg8[%c0_12, %c0_13] : memref<128x128xf32, #tpu.memory_space<vmem>>, vector<128x128xf32>
    tpu.vector_store %arg8[%c0_12, %c0_13], %14 {strides = array<i32>} : memref<128x128xf32, #tpu.memory_space<vmem>>, vector<128x128xf32>,
    %c1_i32 = arith.constant 1 : i32
    %16 = arith.cmpi eq, %arg0, %c1_i32 : i32
    %17 = arith.extui %16 : i1 to i32
    %c0_i32_14 = arith.constant 0 : i32
    %18 = arith.cmpi ne, %17, %c0_i32_14 : i32
    scf.if %18 {
      %cst_15 = arith.constant 1.000000e+00 : f32
      %19 = vector.broadcast %cst_15 : f32 to vector<1x128xf32>
      %c0_16 = arith.constant 0 : index
      %c0_17 = arith.constant 0 : index
      %20 = vector.load %arg8[%c0_16, %c0_17] : memref<128x128xf32, #tpu.memory_space<vmem>>, vector<128x128xf32>
      %cst_18 = arith.constant dense<0.000000e+00> : vector<1x128xf32>
      %21 = tpu.matmul %19, %20, %cst_18 {dimension_numbers = #tpu.dot_dimension_numbers<[1], [0], [0], [1], [0, 0, 1, 1], [], []>} : vector<1x128xf32>, vector<128x128xf32>, vector<1x128xf32> -> vector<1x128xf32>
      %c0_19 = arith.constant 0 : index
      %c0_20 = arith.constant 0 : index
      %22 = vector.load %arg5[%c0_19, %c0_20] : memref<128x128xf32, #tpu.memory_space<vmem>>, vector<128x128xf32>
      %cst_21 = arith.constant dense<0.000000e+00> : vector<1x128xf32>
      %23 = tpu.matmul %21, %22, %cst_21 {dimension_numbers = #tpu.dot_dimension_numbers<[1], [0], [0], [1], [0, 0, 1, 1], [], []>} : vector<1x128xf32>, vector<128x128xf32>, vector<1x128xf32> -> vector<1x128xf32>
      %c0_22 = arith.constant 0 : index
      %c0_23 = arith.constant 0 : index
      %24 = vector.load %arg6[%c0_22, %c0_23] : memref<1x128xf32, #tpu.memory_space<vmem>>, vector<1x128xf32>
      %25 = arith.addf %23, %24 : vector<1x128xf32>
      %c0_24 = arith.constant 0 : index
      %c0_25 = arith.constant 0 : index
      %26 = vector.load %arg7[%c0_24, %c0_25] : memref<1x128xf32, #tpu.memory_space<vmem>>, vector<1x128xf32>
      tpu.vector_store %arg7[%c0_24, %c0_25], %25 {strides = array<i32>} : memref<1x128xf32, #tpu.memory_space<vmem>>, vector<1x128xf32>,
    } else {
    }
    return
  }
  func.func @transform_0(%arg0: i32) -> (i32, i32) {
    %c0_i32 = arith.constant 0 : i32
    %c0_i32_0 = arith.constant 0 : i32
    %c0_i32_1 = arith.constant 0 : i32
    return %c0_i32, %c0_i32_0 : i32, i32
  }
  func.func @transform_1(%arg0: i32) -> (i32, i32) {
    %c0_i32 = arith.constant 0 : i32
    %c0_i32_0 = arith.constant 0 : i32
    %c0_i32_1 = arith.constant 0 : i32
    return %c0_i32, %c0_i32_0 : i32, i32
  }
  func.func @transform_2(%arg0: i32) -> (i32, i32, i32) {
    %c0_i32 = arith.constant 0 : i32
    %c0_i32_0 = arith.constant 0 : i32
    %c0_i32_1 = arith.constant 0 : i32
    return %arg0, %c0_i32, %c0_i32_0 : i32, i32, i32
  }
  func.func @transform_3(%arg0: i32) -> (i32, i32, i32) {
    %c0_i32 = arith.constant 0 : i32
    %c0_i32_0 = arith.constant 0 : i32
    %c0_i32_1 = arith.constant 0 : i32
    return %arg0, %c0_i32, %c0_i32_0 : i32, i32, i32
  }
  func.func @transform_4(%arg0: i32) -> (i32, i32) {
    %c0_i32 = arith.constant 0 : i32
    %c0_i32_0 = arith.constant 0 : i32
    %c0_i32_1 = arith.constant 0 : i32
    return %c0_i32, %c0_i32_0 : i32, i32
  }
  func.func @transform_5(%arg0: i32) -> (i32, i32) {
    %c0_i32 = arith.constant 0 : i32
    %c0_i32_0 = arith.constant 0 : i32
    %c0_i32_1 = arith.constant 0 : i32
    return %c0_i32, %c0_i32_0 : i32, i32
  }
  func.func @transform_6(%arg0: i32) -> (i32, i32) {
    %c0_i32 = arith.constant 0 : i32
    %c0_i32_0 = arith.constant 0 : i32
    %c0_i32_1 = arith.constant 0 : i32
    return %c0_i32, %c0_i32_0 : i32, i32
  }
}

</mosaic_0001>

<bundles_post_ra>
// kernel: tpu_custom_call.1
= control target key start
LH: loop header
LB: loop body
LE: loop exit
PB: predicated region body
PF: predicated region fallthrough
CT: control target
= control target key end

     0   :  { %s2019_s0 = inlined_call_operand.hbm [shape: f32[128,128], index: 0, kind: input, shape index: {}]   ;;  %s2020_s1 = inlined_call_operand.hbm [shape: f32[128,128], index: 1, kind: input, shape index: {}]   ;;  %s2021_s2 = inlined_call_operand.hbm [shape: f32[2,128,128], index: 2, kind: input, shape index: {}]   ;;  %s2022_s3 = inlined_call_operand.vmem [shape: f32[2,1,128], index: 3, kind: input, shape index: {}]   ;;  %s2023_s4 = inlined_call_operand.hbm [shape: f32[128,128], index: 4, kind: input, shape index: {}]   ;;  %s2024_s5 = inlined_call_operand.vmem [shape: f32[1,128], index: 5, kind: input, shape index: {}]   ;;  %s2025_s6 = inlined_call_operand.hbm [shape: f32[1,128], index: 6, kind: output, shape index: {}]  }
   0x1   :  { %2033 = sst [smem:[#allocation18_spill]] %s2025_s6 }
   0x2   :  { %11 = vsyncpa [#allocation4], 0 }
   0x3   :  { %12 = vsyncpa [#allocation7], 0 }
   0x4   :  { %13 = vsyncpa [#allocation5], 0  ;;  %s1733_s21 = smov 0   ;;  %s1735_s22 = smov 0  }
   0x5   :  { %s1737_s23 = smov 0   ;;  %s1739_s24 = smov 0  }
   0x6 LB: > { %s1752_s25 = sadd.s32 4294967295, %s1685_s24   ;;  %s1755_s26 = sadd.s32 1, %s1685_s24   ;;  %s1685_s24 = sphi %s1739_s24, %s2053_s24   ;;  %s1681_s23 = sphi %s1737_s23, %s2057_s23   ;;  %s1677_s22 = sphi %s1735_s22, %s2056_s22   ;;  %s1673_s21 = sphi %s1733_s21, %s2055_s21  }
   0x7   : > { %2034 = sst [smem:[#allocation16_spill]] %s1755_s26  ;;  %s65_s27 = ssub.s32 %s1685_s24, %s1755_s26 }
   0x8   : > { %s68_s28 = sadd.s32 1, %s1681_s23  ;;  %p66_p0 = scmp.eq.s32.totalorder %s65_s27, 0 }
   0x9   : > { %p75_p1 = scmp.ne.s32.totalorder %s1681_s23, %s1677_s22  ;;  %p76_p2 = scmp.eq.s32.totalorder %s1685_s24, 0 }
   0xa   : > { %p81_p3 = scmp.ne.s32.totalorder %s1677_s22, %s1673_s21  ;;  %p2026_p5 = scmp.eq.s32.totalorder %s1752_s25, 0 }
   0xb   : > { %s1765_s29 = scalar_select %p66_p0, %s1681_s23, %s68_s28  }
   0xc   : > { %p1767_p4 = por %p76_p2, %p75_p1  ;;  %p999_p6 = scmp.ge.s32.totalorder %s1685_s24, 1 }
   0xd   : > { %2035 = sst [smem:[#allocation17_spill]] %s1765_s29  ;;  %p181_p7 = scmp.lt.s32.totalorder %s1685_s24, 3 }
   0xe   : > { %p1776_p8 = por %p2026_p5, %p81_p3  ;;  %s1687_s9 = smov [#allocation3]  }
   0xf   : > { %p1781_p10 = pnand %p999_p6, %p181_p7  ;;  %s193_s10 = sshll.u32 %s1687_s9, 4  ;;  %s194_s10 = int_to_ptr.vmem [resolvable:$true] %s193_s10 }
  0x10   : > { %s2037_s7 = scalar_select %p1776_p8, 1, 0 }
  0x11   : > { %s2038_s8 = scalar_select %p1781_p10, 1, 0 }
  0x12   : > { %p1430_p11 = pneg %p1781_p10  ;;  %p1447_p13 = scmp.lt.s32.totalorder %s1685_s24, 2 }
  0x13   : > { %s1495_s15 = scalar_lea.hbm %s2019_s0, 2048 }
  0x14   : > { %p1789_p12 = pnand %p1430_p11, %p2026_p5  ;;  %p1796_p0 = pnand %p1447_p13, %p1767_p4 }
  0x15   : > { %p1496_p1 = scmp.ne.s32.totalorder %s2019_s0, %s1495_s15  ;;  %p1502_p6 = scmp.lt.u32.totalorder %s1495_s15, %s2019_s0 }
  0x16   : > { %s2040_s12 = scalar_select %p1796_p0, 1, 0 }
  0x17   : > { %p1808_p2 = pneg %p1789_p12 }
  0x19   : > { %p1498_p3 = pnand %p1808_p2, %p1496_p1 }
  0x1b   : > { %p1499_p4 = pneg %p1498_p3 }
  0x1d   : > { %p1504_p7 = pnand %p1502_p6, %p1499_p4 }
  0x1f   : > { %1507 = shalt.err (!%p1504_p7)
}
  0x20   : > { %s1508_s21 = scalar_lea.vmem %s194_s10, 2048  ;;  %p1516_p5 = scmp.lt.s32.totalorder %s194_s10, %s194_s10 }
  0x21   : > { %p1509_p11 = scmp.ne.s32.totalorder %s194_s10, %s1508_s21  ;;  %p1517_p8 = scmp.lt.s32.totalorder %s1508_s21, %s1508_s21 }
  0x23   : > { %p1511_p13 = pnand %p1509_p11, %p1808_p2  ;;  %p1518_p10 = por %p1517_p8, %p1516_p5 }
  0x25   : > { %p1512_p9 = pneg %p1511_p13 }
  0x27   : > { %p1519_p0 = pnand %p1518_p10, %p1512_p9 }
  0x29   : > { %1522 = shalt.err (!%p1519_p0)
}
  0x2a   : > { %s1688_s27 = smov 128   ;;  %s1689_s28 = smov 8  }
  0x2b   : > { %1433 = dma.hbm_to_vmem [thread:$0]  (!%p1789_p12), %s2019_s0, 2048, %s194_s10, [#allocation4], %s1688_s27, %s1688_s27, %s1689_s28  }
  0x2c   : > { %s1690_s13 = smov [#allocation6]   ;;  %s1691_s15 = smov [#allocation9]  }
  0x2d   : > { %s206_s14 = sshll.u32 %s1690_s13, 4  ;;  %s219_s16 = sshll.u32 %s1691_s15, 4  ;;  %s207_s14 = int_to_ptr.vmem [resolvable:$true] %s206_s14  ;;  %s220_s16 = int_to_ptr.vmem [resolvable:$true] %s219_s16 }
  0x2e   : > { %s1523_s20 = scalar_lea.hbm %s2020_s1, 2048 }
  0x2f   : > { %p1524_p5 = scmp.ne.s32.totalorder %s2020_s1, %s1523_s20  ;;  %p1530_p10 = scmp.lt.u32.totalorder %s1523_s20, %s2020_s1 }
  0x31   : > { %p1526_p8 = pnand %p1524_p5, %p1808_p2 }
  0x33   : > { %p1527_p9 = pneg %p1526_p8 }
  0x35   : > { %p1532_p0 = pnand %p1530_p10, %p1527_p9 }
  0x37   : > { %1535 = shalt.err (!%p1532_p0)
}
  0x38   : > { %s1536_s10 = scalar_lea.vmem %s207_s14, 2048  ;;  %p1544_p6 = scmp.lt.s32.totalorder %s207_s14, %s207_s14 }
  0x39   : > { %p1537_p1 = scmp.ne.s32.totalorder %s207_s14, %s1536_s10  ;;  %p1545_p7 = scmp.lt.s32.totalorder %s1536_s10, %s1536_s10 }
  0x3b   : > { %p1539_p3 = pnand %p1537_p1, %p1808_p2  ;;  %p1546_p11 = por %p1545_p7, %p1544_p6 }
  0x3d   : > { %p1540_p4 = pneg %p1539_p3 }
  0x3f   : > { %p1547_p13 = pnand %p1546_p11, %p1540_p4 }
  0x41   : > { %1550 = shalt.err (!%p1547_p13)
}
  0x42   : > { %1436 = dma.hbm_to_vmem [thread:$0]  (!%p1789_p12), %s2020_s1, 2048, %s207_s14, [#allocation7], %s1688_s27, %s1688_s27, %s1689_s28  }
  0x43   : > { %s236_s29 = sand.u32 1, %s1685_s24   ;;  %s1551_s13 = scalar_lea.hbm %s2023_s4, 2048 }
  0x44   : > { %p1552_p5 = scmp.ne.s32.totalorder %s2023_s4, %s1551_s13  ;;  %p1558_p10 = scmp.lt.u32.totalorder %s1551_s13, %s2023_s4 }
  0x46   : > { %p1554_p8 = pnand %p1552_p5, %p1808_p2 }
  0x48   : > { %p1555_p9 = pneg %p1554_p8 }
  0x4a   : > { %p1560_p0 = pnand %p1558_p10, %p1555_p9 }
  0x4c   : > { %1563 = shalt.err (!%p1560_p0)
}
  0x4d   : > { %s1564_s14 = scalar_lea.vmem %s220_s16, 2048  ;;  %p1572_p6 = scmp.lt.s32.totalorder %s220_s16, %s220_s16 }
  0x4e   : > { %p1565_p1 = scmp.ne.s32.totalorder %s220_s16, %s1564_s14  ;;  %p1573_p7 = scmp.lt.s32.totalorder %s1564_s14, %s1564_s14 }
  0x50   : > { %p1567_p3 = pnand %p1565_p1, %p1808_p2  ;;  %p1574_p11 = por %p1573_p7, %p1572_p6 }
  0x52   : > { %p1568_p4 = pneg %p1567_p3 }
  0x54   : > { %p1575_p13 = pnand %p1574_p11, %p1568_p4 }
  0x56   : > { %1578 = shalt.err (!%p1575_p13)
}
  0x57   : > { %1439 = dma.hbm_to_vmem [thread:$0]  (!%p1789_p12), %s2023_s4, 2048, %s220_s16, [#allocation7], %s1688_s27, %s1688_s27, %s1689_s28  }
  0x58   : > { %s238_s18 = sand.u32 1, %s1681_s23   ;;  %s1019_s26 = sshll.u32 %s1685_s24, 11 }
  0x59   : > { %s1004_s6 = sshll.u32 %s238_s18, 7  ;;  %s1875_s13 = scalar_lea.hbm %s2021_s2, %s1019_s26 }
  0x5a   : > { %s240_s11 = scalar_lea.vmem [#allocation8], %s1004_s6  ;;  %s1879_s17 = scalar_lea.sflag [#allocation4], %s236_s29 }
  0x5b   : > { %s247_s15 = sshll.u32 %s240_s11, 4  ;;  %s1579_s19 = scalar_lea.hbm %s1875_s13, 2048  ;;  %s1877_s15 = int_to_ptr.vmem [resolvable:$true] %s247_s15 }
  0x5c   : > { %p1580_p12 = scmp.ne.s32.totalorder %s1875_s13, %s1579_s19  ;;  %p2042_p2 = scmp.ne.s32.totalorder %s2040_s12, 0 }
  0x5d   : > { %s1584_s20 = scalar_lea.hbm %s2021_s2, 4096  ;;  %p1585_p10 = scmp.lt.u32.totalorder %s1875_s13, %s2021_s2 }
  0x5e   : > { %p1581_p5 = pneg %p2042_p2  ;;  %p1586_p0 = scmp.lt.u32.totalorder %s1584_s20, %s1579_s19 }
  0x5f   : > { %p1588_p3 = scmp.lt.u32.totalorder %s1579_s19, %s1875_s13 }
  0x60   : > { %p1582_p8 = pnand %p1581_p5, %p1580_p12  ;;  %p1587_p1 = por %p1586_p0, %p1585_p10 }
  0x62   : > { %p1583_p9 = pneg %p1582_p8  ;;  %p1589_p4 = por %p1588_p3, %p1587_p1 }
  0x64   : > { %p1590_p6 = pnand %p1589_p4, %p1583_p9 }
  0x66   : > { %1593 = shalt.err (!%p1590_p6)
}
  0x67   : > { %s1594_s29 = scalar_lea.vmem %s1877_s15, 2048  ;;  %s1692_s10 = smov [#allocation8]  }
  0x68   : > { %p1595_p7 = scmp.ne.s32.totalorder %s1877_s15, %s1594_s29  ;;  %s1599_s18 = sshll.u32 %s1692_s10, 4  ;;  %s1600_s18 = int_to_ptr.vmem [resolvable:$false] %s1599_s18 }
  0x69   : > { %s1601_s6 = scalar_lea.vmem %s1600_s18, 4096  ;;  %p1602_p12 = scmp.lt.s32.totalorder %s1877_s15, %s1600_s18 }
  0x6a   : > { %p1597_p11 = pnand %p1595_p7, %p1581_p5  ;;  %p1603_p8 = scmp.lt.s32.totalorder %s1601_s6, %s1594_s29 }
  0x6c   : > { %p1598_p13 = pneg %p1597_p11  ;;  %p1604_p10 = por %p1603_p8, %p1602_p12 }
  0x6e   : > { %p1605_p0 = pnand %p1604_p10, %p1598_p13 }
  0x70   : > { %1608 = shalt.err (!%p1605_p0)
}
  0x71   : > { %1443 = dma.hbm_to_vmem [thread:$0]  (!%p2042_p2), %s1875_s13, 2048, %s1877_s15, %s1879_s17, %s1688_s27, %s1688_s27, %s1689_s28  }
  0x72   : > { %p2043_p5 = scmp.ne.s32.totalorder %s2038_s8, 0 }
  0x73   : > { %p2044_p9 = scmp.eq.s32.totalorder (!%p2043_p5), %s1752_s25, 0 }
  0x74   : > { %265 = sbr.rel (%p2043_p5) target bundleno = 1145 (0x479), region = 44 }
  0x7b   : > { %1652 = dma.done.wait (%p2044_p9), [#allocation4], 2048   ;;  %p2045_p1 = pmov %p2044_p9 }
  0x7d   : > { %1654 = vsyncadd (%p2045_p1), [#allocation4], 4294965248  ;;  %p2046_p3 = pmov %p2045_p1 }
  0x7e   : > { %p2047_p4 = pmov %p2045_p1 }
  0x7f   : > { %1656 = dma.done.wait (%p2046_p3), [#allocation7], 2048  }
  0x80   : > { %1658 = vsyncadd (%p2047_p4), [#allocation7], 4294965248  ;;  %s275_s12 = sand.u32 1, %s1752_s25   ;;  %s277_s27 = sand.u32 1, %s1677_s22  }
  0x81   : > { %s1010_s28 = sshll.u32 %s277_s27, 7  ;;  %s276_s8 = scalar_lea.sflag [#allocation4], %s275_s12 }
  0x82   : > { %s1922_s26 = scalar_lea.vmem [#allocation8], %s1010_s28  ;;  %p2048_p2 = scmp.ne.s32.totalorder %s2037_s7, 0 }
  0x84   : > { %1660 = dma.done.wait (%p2048_p2), %s276_s8, 2048  }
  0x85   : > { %1662 = vsyncadd (%p2048_p2), %s276_s8, 4294965248  ;;  %p2049_p6 = pmov %p2045_p1 }
  0x86   : > { %p2050_p7 = pmov %p2045_p1 }
  0x87   : > { %1664 = dma.done.wait (%p2049_p6), [#allocation7], 2048  }
  0x88   : > { %1666 = vsyncadd (%p2050_p7), [#allocation7], 4294965248  ;;  %p310_p11 = scmp.lt.s32.totalorder %s1752_s25, 1  ;;  %p2051_p13 = scmp.ne.s32.totalorder %s1752_s25, 0 }
  0x89   : > { %v317_v0 = vld [vmem:[#allocation3] sm:$0xff] (!%p2051_p13)  ;;  %v318_v1 = vld [vmem:[#allocation3 + $0x8] sm:$0xff] (!%p2051_p13)  ;;  %v319_v2 = vld [vmem:[#allocation3 + $0x10] sm:$0xff] (!%p2051_p13) }
  0x8a   : > { %s1934_s30 = scalar_select %p310_p11, %s1752_s25, 1 }
  0x8b   : > { %316 = sbr.rel (%p2051_p13) target bundleno = 147 (0x93), region = 64  ;;  %333 = vst [vmem:[#allocation2] sm:$0xff] (!%p2051_p13), %v317_v0  ;;  %334 = vst [vmem:[#allocation2 + $0x8] sm:$0xff] (!%p2051_p13), %v318_v1  ;;  %v320_v3 = vld [vmem:[#allocation3 + $0x18] sm:$0xff] (!%p2051_p13)  ;;  %v321_v4 = vld [vmem:[#allocation3 + $0x20] sm:$0xff] (!%p2051_p13) }
  0x8c   : > { %s312_s11 = scalar_lea.vmem %s2022_s3, %s1934_s30  ;;  %335 = vst [vmem:[#allocation2 + $0x10] sm:$0xff] (!%p2051_p13), %v319_v2  ;;  %v322_v5 = vld [vmem:[#allocation3 + $0x28] sm:$0xff] (!%p2051_p13)  ;;  %336 = vst [vmem:[#allocation2 + $0x18] sm:$0xff] (!%p2051_p13), %v320_v3  ;;  %v323_v6 = vld [vmem:[#allocation3 + $0x30] sm:$0xff] (!%p2051_p13) }
  0x8d   : > { %337 = vst [vmem:[#allocation2 + $0x20] sm:$0xff] (!%p2051_p13), %v321_v4  ;;  %338 = vst [vmem:[#allocation2 + $0x28] sm:$0xff] (!%p2051_p13), %v322_v5  ;;  %v324_v7 = vld [vmem:[#allocation3 + $0x38] sm:$0xff] (!%p2051_p13)  ;;  %v325_v8 = vld [vmem:[#allocation3 + $0x40] sm:$0xff] (!%p2051_p13) }
  0x8e   : > { %339 = vst [vmem:[#allocation2 + $0x30] sm:$0xff] (!%p2051_p13), %v323_v6  ;;  %340 = vst [vmem:[#allocation2 + $0x38] sm:$0xff] (!%p2051_p13), %v324_v7  ;;  %v326_v9 = vld [vmem:[#allocation3 + $0x48] sm:$0xff] (!%p2051_p13)  ;;  %v327_v10 = vld [vmem:[#allocation3 + $0x50] sm:$0xff] (!%p2051_p13) }
  0x8f   : > { %341 = vst [vmem:[#allocation2 + $0x40] sm:$0xff] (!%p2051_p13), %v325_v8  ;;  %v328_v11 = vld [vmem:[#allocation3 + $0x58] sm:$0xff] (!%p2051_p13)  ;;  %342 = vst [vmem:[#allocation2 + $0x48] sm:$0xff] (!%p2051_p13), %v326_v9  ;;  %v329_v12 = vld [vmem:[#allocation3 + $0x60] sm:$0xff] (!%p2051_p13) }
  0x90   : > { %343 = vst [vmem:[#allocation2 + $0x50] sm:$0xff] (!%p2051_p13), %v327_v10  ;;  %344 = vst [vmem:[#allocation2 + $0x58] sm:$0xff] (!%p2051_p13), %v328_v11  ;;  %v330_v13 = vld [vmem:[#allocation3 + $0x68] sm:$0xff] (!%p2051_p13)  ;;  %v331_v14 = vld [vmem:[#allocation3 + $0x70] sm:$0xff] (!%p2051_p13) }
  0x91   : > { %345 = vst [vmem:[#allocation2 + $0x60] sm:$0xff] (!%p2051_p13), %v329_v12  ;;  %346 = vst [vmem:[#allocation2 + $0x68] sm:$0xff] (!%p2051_p13), %v330_v13  ;;  %v332_v15 = vld [vmem:[#allocation3 + $0x78] sm:$0xff] (!%p2051_p13) }
  0x92   : > { %347 = vst [vmem:[#allocation2 + $0x70] sm:$0xff] %v331_v14  ;;  %348 = vst [vmem:[#allocation2 + $0x78] sm:$0xff] %v332_v15 }
  0x93 PF: > { %v365_v16 = vld [vmem:[%s1922_s26] sm:$0xff]  ;;  %v366_v17 = vld [vmem:[%s1922_s26 + $0x8] sm:$0xff]  ;;  %v367_v18 = vld [vmem:[%s1922_s26 + $0x10] sm:$0xff]  ;;  %p1014_p12 = scmp.ne.s32.totalorder %s1752_s25, 1 }
  0x94   : > { %v1300_v19 = vpack.c.bf16 %v366_v17, %v365_v16  ;;  %v368_v20 = vld [vmem:[%s1922_s26 + $0x18] sm:$0xff]  ;;  %v369_v22 = vld [vmem:[%s1922_s26 + $0x20] sm:$0xff]  ;;  %v370_v23 = vld [vmem:[%s1922_s26 + $0x28] sm:$0xff]  ;;  %vm1694_vm0 = vmmov (!%p1014_p12), 0  }
  0x95   : > { %v1304_v21 = vpack.c.bf16 %v368_v20, %v367_v18  ;;  %v1308_v24 = vpack.c.bf16 %v370_v23, %v369_v22  ;;  %v349_v25 = vld [vmem:[#allocation2] sm:$0xff]  ;;  %v371_v26 = vld [vmem:[%s1922_s26 + $0x30] sm:$0xff]  ;;  %v372_v27 = vld [vmem:[%s1922_s26 + $0x38] sm:$0xff] }
  0x96   : > { %1301 = vmatprep.subr.bf16.mxu0 %v1300_v19  ;;  %1150 = vmatprep.mubr.f32.mxu0 %v349_v25  ;;  %v1312_v28 = vpack.c.bf16 %v372_v27, %v371_v26  ;;  %v373_v29 = vld [vmem:[%s1922_s26 + $0x40] sm:$0xff]  ;;  %v374_v30 = vld [vmem:[%s1922_s26 + $0x48] sm:$0xff]  ;;  %v375_v32 = vld [vmem:[%s1922_s26 + $0x50] sm:$0xff] }
  0x97   : > { %1303 = vmatpush3.bf16.msra.mxu0 %v1300_v19  ;;  %v1316_v31 = vpack.c.bf16 %v374_v30, %v373_v29  ;;  %v376_v33 = vld [vmem:[%s1922_s26 + $0x58] sm:$0xff]  ;;  %v377_v35 = vld [vmem:[%s1922_s26 + $0x60] sm:$0xff]  ;;  %v378_v36 = vld [vmem:[%s1922_s26 + $0x68] sm:$0xff] }
  0x98   : > { %1305 = vmatprep.subr.bf16.mxu0 %v1304_v21  ;;  %v1320_v34 = vpack.c.bf16 %v376_v33, %v375_v32  ;;  %v1324_v37 = vpack.c.bf16 %v378_v36, %v377_v35  ;;  %v379_v38 = vld [vmem:[%s1922_s26 + $0x70] sm:$0xff]  ;;  %v380_v39 = vld [vmem:[%s1922_s26 + $0x78] sm:$0xff]  ;;  %v350_v41 = vld [vmem:[#allocation2 + $0x8] sm:$0xff] }
  0x99   : > { %v1328_v40 = vpack.c.bf16 %v380_v39, %v379_v38  ;;  %v351_v42 = vld [vmem:[#allocation2 + $0x10] sm:$0xff]  ;;  %v352_v43 = vld [vmem:[#allocation2 + $0x18] sm:$0xff]  ;;  %v353_v44 = vld [vmem:[#allocation2 + $0x20] sm:$0xff] }
  0x9a   : > { %v354_v45 = vld [vmem:[#allocation2 + $0x28] sm:$0xff]  ;;  %v355_v46 = vld [vmem:[#allocation2 + $0x30] sm:$0xff]  ;;  %v356_v47 = vld [vmem:[#allocation2 + $0x38] sm:$0xff] }
  0x9b   : > { %1307 = vmatpush3.bf16.msra.mxu0 %v1304_v21  ;;  %v357_v48 = vld [vmem:[#allocation2 + $0x40] sm:$0xff]  ;;  %v358_v49 = vld [vmem:[#allocation2 + $0x48] sm:$0xff]  ;;  %v359_v50 = vld [vmem:[#allocation2 + $0x50] sm:$0xff] }
  0x9c   : > { %1309 = vmatprep.subr.bf16.mxu0 %v1308_v24  ;;  %v360_v51 = vld [vmem:[#allocation2 + $0x58] sm:$0xff]  ;;  %v361_v52 = vld [vmem:[#allocation2 + $0x60] sm:$0xff]  ;;  %v362_v53 = vld [vmem:[#allocation2 + $0x68] sm:$0xff] }
  0x9d   : > { %v363_v54 = vld [vmem:[#allocation2 + $0x70] sm:$0xff]  ;;  %v364_v55 = vld [vmem:[#allocation2 + $0x78] sm:$0xff]  ;;  %v533_v56 = vld [vmem:[#allocation6] sm:$0xff] }
  0x9e   : > { %1206 = vmatprep.mubr.f32.mxu1 %v533_v56  ;;  %v1013_v57 = vld [vmem:[%s312_s11] ss:$0 sm:$0xff]  ;;  %v535_v35 = vld [vmem:[#allocation6 + $0x10] sm:$0xff]  ;;  %v536_v36 = vld [vmem:[#allocation6 + $0x18] sm:$0xff] }
  0x9f   : > { %1311 = vmatpush3.bf16.msra.mxu0 %v1308_v24  ;;  %v538_v38 = vld [vmem:[#allocation6 + $0x28] sm:$0xff]  ;;  %v539_v39 = vld [vmem:[#allocation6 + $0x30] sm:$0xff] }
  0xa0   : > { %1313 = vmatprep.subr.bf16.mxu0 %v1312_v28 }
  0xa3   : > { %1315 = vmatpush3.bf16.msra.mxu0 %v1312_v28 }
  0xa4   : > { %1317 = vmatprep.subr.bf16.mxu0 %v1316_v31 }
  0xa7   : > { %1319 = vmatpush3.bf16.msra.mxu0 %v1316_v31 }
  0xa8   : > { %1321 = vmatprep.subr.bf16.mxu0 %v1320_v34 }
  0xab   : > { %1323 = vmatpush3.bf16.msra.mxu0 %v1320_v34  ;;  %v534_v34 = vld [vmem:[#allocation6 + $0x8] sm:$0xff] }
  0xac   : > { %1325 = vmatprep.subr.bf16.mxu0 %v1324_v37 }
  0xaf   : > { %1327 = vmatpush3.bf16.msra.mxu0 %v1324_v37  ;;  %v537_v37 = vld [vmem:[#allocation6 + $0x20] sm:$0xff] }
  0xb0   : > { %1329 = vmatprep.subr.bf16.mxu0 %v1328_v40 }
  0xb3   : > { %1331 = vmatpush3.bf16.msra.mxu0 %v1328_v40  ;;  %v540_v40 = vld [vmem:[#allocation6 + $0x38] sm:$0xff] }
  0xb6   : > { %1151 = vmatmul.mubr.f32.vlgmr.msra.gmra.mrb[0].mxu0 %v350_v41  ;;  %v541_v41 = vld [vmem:[#allocation6 + $0x40] sm:$0xff] }
  0xb7   : > { %1153 = vmatprep.mubr.f32.mxu0 %v351_v42  ;;  %v542_v42 = vld [vmem:[#allocation6 + $0x48] sm:$0xff] }
  0xba   : > { %1154 = vmatmul.mubr.f32.gmra.mrb[2].mxu0 %v352_v43  ;;  %v543_v43 = vld [vmem:[#allocation6 + $0x50] sm:$0xff] }
  0xbb   : > { %1156 = vmatprep.mubr.f32.mxu0 %v353_v44  ;;  %v544_v44 = vld [vmem:[#allocation6 + $0x58] sm:$0xff] }
  0xbe   : > { %1157 = vmatmul.mubr.f32.gmra.mrb[4].mxu0 %v354_v45  ;;  %v545_v45 = vld [vmem:[#allocation6 + $0x60] sm:$0xff] }
  0xbf   : > { %1159 = vmatprep.mubr.f32.mxu0 %v355_v46  ;;  %v546_v46 = vld [vmem:[#allocation6 + $0x68] sm:$0xff] }
  0xc2   : > { %1160 = vmatmul.mubr.f32.gmra.mrb[6].mxu0 %v356_v47  ;;  %v547_v47 = vld [vmem:[#allocation6 + $0x70] sm:$0xff] }
  0xc3   : > { %1162 = vmatprep.mubr.f32.mxu0 %v357_v48  ;;  %v548_v48 = vld [vmem:[#allocation6 + $0x78] sm:$0xff] }
  0xc6   : > { %1163 = vmatmul.mubr.f32.gmra.mrb[8].mxu0 %v358_v49 }
  0xc7   : > { %1165 = vmatprep.mubr.f32.mxu0 %v359_v50 }
  0xca   : > { %1166 = vmatmul.mubr.f32.gmra.mrb[10].mxu0 %v360_v51 }
  0xcb   : > { %1168 = vmatprep.mubr.f32.mxu0 %v361_v52 }
  0xce   : > { %1169 = vmatmul.mubr.f32.gmra.mrb[12].mxu0 %v362_v53 }
  0xcf   : > { %1171 = vmatprep.mubr.f32.mxu0 %v363_v54 }
  0xd2   : > { %1172 = vmatmul.mubr.f32.gmra.mrb[14].mxu0 %v364_v55 }
 0x189   : > { %v1152_v58 = vpop.f32.mrb[0].mxu0 }
 0x18a   : > { %v460_v59 = vadd.f32 %v1152_v58, %v1013_v57  ;;  %v454_v60 = vpop.f32.mrb[1].mxu0 }
 0x18b   : > { %v455_v61 = vadd.f32 %v1013_v57, %v454_v60 }
 0x18d   : > { %v1155_v62 = vpop.f32.mrb[2].mxu0  ;;  %v1332_v63 = vpack.c.bf16 %v460_v59, %v455_v61 }
 0x18e   : > { %v470_v0 = vadd.f32 %v1155_v62, %v1013_v57  ;;  %v464_v1 = vpop.f32.mrb[3].mxu0 }
 0x18f   : > { %v465_v2 = vadd.f32 %v1013_v57, %v464_v1  ;;  %1333 = vmatprep.subr.bf16.mxu1 %v1332_v63 }
 0x190   : > { %1335 = vmatpush3.bf16.msra.mxu1 %v1332_v63 }
 0x191   : > { %v1336_v3 = vpack.c.bf16 %v470_v0, %v465_v2  ;;  %v1158_v4 = vpop.f32.mrb[4].mxu0 }
 0x192   : > { %v480_v5 = vadd.f32 %v1158_v4, %v1013_v57  ;;  %v474_v6 = vpop.f32.mrb[5].mxu0 }
 0x193   : > { %v475_v7 = vadd.f32 %v1013_v57, %v474_v6  ;;  %1337 = vmatprep.subr.bf16.mxu1 %v1336_v3 }
 0x194   : > { %1339 = vmatpush3.bf16.msra.mxu1 %v1336_v3 }
 0x195   : > { %v1340_v8 = vpack.c.bf16 %v480_v5, %v475_v7  ;;  %v1161_v9 = vpop.f32.mrb[6].mxu0 }
 0x196   : > { %v490_v10 = vadd.f32 %v1161_v9, %v1013_v57  ;;  %v484_v11 = vpop.f32.mrb[7].mxu0 }
 0x197   : > { %v485_v12 = vadd.f32 %v1013_v57, %v484_v11  ;;  %1341 = vmatprep.subr.bf16.mxu1 %v1340_v8 }
 0x198   : > { %1343 = vmatpush3.bf16.msra.mxu1 %v1340_v8 }
 0x199   : > { %v1344_v13 = vpack.c.bf16 %v490_v10, %v485_v12  ;;  %v1164_v14 = vpop.f32.mrb[8].mxu0 }
 0x19a   : > { %v500_v15 = vadd.f32 %v1164_v14, %v1013_v57  ;;  %v494_v16 = vpop.f32.mrb[9].mxu0 }
 0x19b   : > { %v495_v17 = vadd.f32 %v1013_v57, %v494_v16  ;;  %1345 = vmatprep.subr.bf16.mxu1 %v1344_v13 }
 0x19c   : > { %1347 = vmatpush3.bf16.msra.mxu1 %v1344_v13 }
 0x19d   : > { %v1348_v18 = vpack.c.bf16 %v500_v15, %v495_v17  ;;  %v1167_v19 = vpop.f32.mrb[10].mxu0 }
 0x19e   : > { %v510_v20 = vadd.f32 %v1167_v19, %v1013_v57  ;;  %v504_v21 = vpop.f32.mrb[11].mxu0 }
 0x19f   : > { %v505_v22 = vadd.f32 %v1013_v57, %v504_v21  ;;  %1349 = vmatprep.subr.bf16.mxu1 %v1348_v18 }
 0x1a0   : > { %1351 = vmatpush3.bf16.msra.mxu1 %v1348_v18 }
 0x1a1   : > { %v1352_v23 = vpack.c.bf16 %v510_v20, %v505_v22  ;;  %v1170_v24 = vpop.f32.mrb[12].mxu0  ;;  %v1693_v20 = vmov (!%p1014_p12), 0.0|0.0  }
 0x1a2   : > { %v520_v25 = vadd.f32 %v1170_v24, %v1013_v57  ;;  %v514_v26 = vpop.f32.mrb[13].mxu0  ;;  %1364 = vmatprep.subr.bf16.mxu0 (!%p1014_p12), %v1693_v20 }
 0x1a3   : > { %v515_v27 = vadd.f32 %v1013_v57, %v514_v26  ;;  %1353 = vmatprep.subr.bf16.mxu1 %v1352_v23 }
 0x1a4   : > { %1355 = vmatpush3.bf16.msra.mxu1 %v1352_v23  ;;  %v1695_v23 = vmov (!%p1014_p12), 0.0  }
 0x1a5   : > { %v1356_v28 = vpack.c.bf16 %v520_v25, %v515_v27  ;;  %v1173_v29 = vpop.f32.mrb[14].mxu0  ;;  %1262 = vmatprep.mubr.msk.f32.mxu0 (!%p1014_p12), %vm1694_vm0, %v1695_v23  ;;  %v816_v27 = vld [vmem:[#allocation9] sm:$0xff] (!%p1014_p12) }
 0x1a6   : > { %v530_v30 = vadd.f32 %v1173_v29, %v1013_v57  ;;  %v524_v31 = vpop.f32.mrb[15].mxu0 }
 0x1a7   : > { %v525_v32 = vadd.f32 %v1013_v57, %v524_v31  ;;  %1357 = vmatprep.subr.bf16.mxu1 %v1356_v28  ;;  %v819_v31 = vld [vmem:[#allocation9 + $0x18] sm:$0xff] (!%p1014_p12) }
 0x1a8   : > { %1359 = vmatpush3.bf16.msra.mxu1 %v1356_v28  ;;  %v817_v28 = vld [vmem:[#allocation9 + $0x8] sm:$0xff] (!%p1014_p12) }
 0x1a9   : > { %v1360_v33 = vpack.c.bf16 %v530_v30, %v525_v32  ;;  %v1389_v29 = vpack.c.bf16 (!%p1014_p12), %v817_v28, %v816_v27  ;;  %v818_v30 = vld [vmem:[#allocation9 + $0x10] sm:$0xff] (!%p1014_p12) }
 0x1ab   : > { %1361 = vmatprep.subr.bf16.mxu1 %v1360_v33 }
 0x1ac   : > { %1363 = vmatpush3.bf16.msra.mxu1 %v1360_v33 }
 0x1ad   : > { %1388 = vmatprep.subr.bf16.mxu1 (!%p1014_p12), %v1693_v20 }
 0x1af   : > { %1207 = vmatmul.mubr.f32.vlgmr.msra.gmra.mrb[0].mxu1 %v534_v34 }
 0x1b0   : > { %1209 = vmatprep.mubr.f32.mxu1 %v535_v35  ;;  %1390 = vmatpush3.bf16.msra.mxu1 (!%p1014_p12), %v1389_v29  ;;  %v1392_v35 = vpack.c.bf16 (!%p1014_p12), %v819_v31, %v818_v30 }
 0x1b1   : > { %1391 = vmatprep.subr.bf16.mxu1 (!%p1014_p12), %v1693_v20 }
 0x1b3   : > { %1210 = vmatmul.mubr.f32.gmra.mrb[2].mxu1 %v536_v36  ;;  %v820_v36 = vld [vmem:[#allocation9 + $0x20] sm:$0xff] (!%p1014_p12) }
 0x1b4   : > { %1212 = vmatprep.mubr.f32.mxu1 %v537_v37  ;;  %v821_v37 = vld [vmem:[#allocation9 + $0x28] sm:$0xff] (!%p1014_p12)  ;;  %1393 = vmatpush3.bf16.msra.mxu1 (!%p1014_p12), %v1392_v35 }
 0x1b5   : > { %1394 = vmatprep.subr.bf16.mxu1 (!%p1014_p12), %v1693_v20 }
 0x1b7   : > { %1213 = vmatmul.mubr.f32.gmra.mrb[4].mxu1 %v538_v38 }
 0x1b8   : > { %1215 = vmatprep.mubr.f32.mxu1 %v539_v39 }
 0x1bb   : > { %1216 = vmatmul.mubr.f32.gmra.mrb[6].mxu1 %v540_v40 }
 0x1bc   : > { %1218 = vmatprep.mubr.f32.mxu1 %v541_v41  ;;  %v1395_v41 = vpack.c.bf16 (!%p1014_p12), %v821_v37, %v820_v36 }
 0x1be   : > { %1396 = vmatpush3.bf16.msra.mxu1 (!%p1014_p12), %v1395_v41 }
 0x1bf   : > { %1219 = vmatmul.mubr.f32.gmra.mrb[8].mxu1 %v542_v42  ;;  %v822_v42 = vld [vmem:[#allocation9 + $0x30] sm:$0xff] (!%p1014_p12)  ;;  %1397 = vmatprep.subr.bf16.mxu1 (!%p1014_p12), %v1693_v20 }
 0x1c0   : > { %1221 = vmatprep.mubr.f32.mxu1 %v543_v43  ;;  %v823_v43 = vld [vmem:[#allocation9 + $0x38] sm:$0xff] (!%p1014_p12) }
 0x1c3   : > { %1222 = vmatmul.mubr.f32.gmra.mrb[10].mxu1 %v544_v44 }
 0x1c4   : > { %1224 = vmatprep.mubr.f32.mxu1 %v545_v45 }
 0x1c7   : > { %1225 = vmatmul.mubr.f32.gmra.mrb[12].mxu1 %v546_v46 }
 0x1c8   : > { %1227 = vmatprep.mubr.f32.mxu1 %v547_v47  ;;  %v1398_v47 = vpack.c.bf16 (!%p1014_p12), %v823_v43, %v822_v42 }
 0x1ca   : > { %1399 = vmatpush3.bf16.msra.mxu1 (!%p1014_p12), %v1398_v47 }
 0x1cb   : > { %1228 = vmatmul.mubr.f32.gmra.mrb[14].mxu1 %v548_v48  ;;  %v824_v48 = vld [vmem:[#allocation9 + $0x40] sm:$0xff] (!%p1014_p12)  ;;  %1400 = vmatprep.subr.bf16.mxu1 (!%p1014_p12), %v1693_v20 }
 0x1cc   : > { %1297 = vmatprep.mubr.msk.f32.mxu1 (!%p1014_p12), %vm1694_vm0, %v1695_v23 }
 0x282   : > { %v1208_v49 = vpop.f32.mrb[0].mxu1 }
 0x283   : > { %v695_v50 = vmax.f32 %v1208_v49, 0.0  ;;  %v615_v51 = vpop.f32.mrb[1].mxu1  ;;  %v825_v49 = vld [vmem:[#allocation9 + $0x48] sm:$0xff] (!%p1014_p12) }
 0x284   : > { %v694_v52 = vmax.f32 %v615_v51, 0.0 }
 0x285   : > { %711 = vst [vmem:[#allocation2 + $0x8] sm:$0xff] %v695_v50 }
 0x286   : > { %710 = vst [vmem:[#allocation2] sm:$0xff] %v694_v52  ;;  %v1211_v53 = vpop.f32.mrb[2].mxu1 }
 0x287   : > { %v697_v54 = vmax.f32 %v1211_v53, 0.0  ;;  %v625_v55 = vpop.f32.mrb[3].mxu1  ;;  %v1401_v53 = vpack.c.bf16 (!%p1014_p12), %v825_v49, %v824_v48 }
 0x288   : > { %v696_v56 = vmax.f32 %v625_v55, 0.0  ;;  %v827_v55 = vld [vmem:[#allocation9 + $0x58] sm:$0xff] (!%p1014_p12) }
 0x289   : > { %713 = vst [vmem:[#allocation2 + $0x18] sm:$0xff] %v697_v54  ;;  %v826_v54 = vld [vmem:[#allocation9 + $0x50] sm:$0xff] (!%p1014_p12)  ;;  %1402 = vmatpush3.bf16.msra.mxu1 (!%p1014_p12), %v1401_v53 }
 0x28a   : > { %712 = vst [vmem:[#allocation2 + $0x10] sm:$0xff] %v696_v56  ;;  %v1214_v57 = vpop.f32.mrb[4].mxu1  ;;  %1403 = vmatprep.subr.bf16.mxu1 (!%p1014_p12), %v1693_v20 }
 0x28b   : > { %v699_v58 = vmax.f32 %v1214_v57, 0.0  ;;  %v635_v59 = vpop.f32.mrb[5].mxu1 }
 0x28c   : > { %v698_v60 = vmax.f32 %v635_v59, 0.0  ;;  %v731_v18 = vld [vmem:[#allocation2 + $0x8] sm:$0xff] (!%p1014_p12)  ;;  %v1404_v59 = vpack.c.bf16 (!%p1014_p12), %v827_v55, %v826_v54 }
 0x28d   : > { %715 = vst [vmem:[#allocation2 + $0x28] sm:$0xff] %v699_v58  ;;  %v730_v17 = vld [vmem:[#allocation2] sm:$0xff] (!%p1014_p12) }
 0x28e   : > { %714 = vst [vmem:[#allocation2 + $0x20] sm:$0xff] %v698_v60  ;;  %v1217_v61 = vpop.f32.mrb[6].mxu1  ;;  %v1365_v21 = vpack.c.bf16 (!%p1014_p12), %v731_v18, %v730_v17  ;;  %v828_v60 = vld [vmem:[#allocation9 + $0x60] sm:$0xff] (!%p1014_p12)  ;;  %1405 = vmatpush3.bf16.msra.mxu1 (!%p1014_p12), %v1404_v59 }
 0x28f   : > { %v701_v62 = vmax.f32 %v1217_v61, 0.0  ;;  %v645_v63 = vpop.f32.mrb[7].mxu1  ;;  %v829_v61 = vld [vmem:[#allocation9 + $0x68] sm:$0xff] (!%p1014_p12)  ;;  %1406 = vmatprep.subr.bf16.mxu1 (!%p1014_p12), %v1693_v20 }
 0x290   : > { %v700_v0 = vmax.f32 %v645_v63, 0.0  ;;  %v733_v22 = vld [vmem:[#allocation2 + $0x18] sm:$0xff] (!%p1014_p12)  ;;  %1366 = vmatpush3.bf16.msra.mxu0 (!%p1014_p12), %v1365_v21  ;;  %v1407_v63 = vpack.c.bf16 (!%p1014_p12), %v829_v61, %v828_v60 }
 0x291   : > { %717 = vst [vmem:[#allocation2 + $0x38] sm:$0xff] %v701_v62  ;;  %v732_v19 = vld [vmem:[#allocation2 + $0x10] sm:$0xff] (!%p1014_p12)  ;;  %1367 = vmatprep.subr.bf16.mxu0 (!%p1014_p12), %v1693_v20 }
 0x292   : > { %716 = vst [vmem:[#allocation2 + $0x30] sm:$0xff] %v700_v0  ;;  %v1220_v1 = vpop.f32.mrb[8].mxu1  ;;  %v1368_v24 = vpack.c.bf16 (!%p1014_p12), %v733_v22, %v732_v19  ;;  %v830_v0 = vld [vmem:[#allocation9 + $0x70] sm:$0xff] (!%p1014_p12)  ;;  %1408 = vmatpush3.bf16.msra.mxu1 (!%p1014_p12), %v1407_v63 }
 0x293   : > { %v703_v2 = vmax.f32 %v1220_v1, 0.0  ;;  %v655_v3 = vpop.f32.mrb[9].mxu1  ;;  %v831_v1 = vld [vmem:[#allocation9 + $0x78] sm:$0xff] (!%p1014_p12)  ;;  %1409 = vmatprep.subr.bf16.mxu1 (!%p1014_p12), %v1693_v20 }
 0x294   : > { %v702_v4 = vmax.f32 %v655_v3, 0.0  ;;  %v735_v26 = vld [vmem:[#allocation2 + $0x28] sm:$0xff] (!%p1014_p12)  ;;  %1369 = vmatpush3.bf16.msra.mxu0 (!%p1014_p12), %v1368_v24  ;;  %v1696_v3 = vmov (!%p1014_p12), 1.0  }
 0x295   : > { %719 = vst [vmem:[#allocation2 + $0x48] sm:$0xff] %v703_v2  ;;  %v734_v25 = vld [vmem:[#allocation2 + $0x20] sm:$0xff] (!%p1014_p12)  ;;  %1370 = vmatprep.subr.bf16.mxu0 (!%p1014_p12), %v1693_v20  ;;  %v1410_v2 = vpack.c.bf16 (!%p1014_p12), %v831_v1, %v830_v0 }
 0x296   : > { %718 = vst [vmem:[#allocation2 + $0x40] sm:$0xff] %v702_v4  ;;  %v1223_v5 = vpop.f32.mrb[10].mxu1  ;;  %v1371_v32 = vpack.c.bf16 (!%p1014_p12), %v735_v26, %v734_v25 }
 0x297   : > { %v705_v6 = vmax.f32 %v1223_v5, 0.0  ;;  %v665_v7 = vpop.f32.mrb[11].mxu1  ;;  %1411 = vmatpush3.bf16.msra.mxu1 (!%p1014_p12), %v1410_v2 }
 0x298   : > { %v704_v8 = vmax.f32 %v665_v7, 0.0  ;;  %v737_v34 = vld [vmem:[#allocation2 + $0x38] sm:$0xff] (!%p1014_p12)  ;;  %1372 = vmatpush3.bf16.msra.mxu0 (!%p1014_p12), %v1371_v32 }
 0x299   : > { %721 = vst [vmem:[#allocation2 + $0x58] sm:$0xff] %v705_v6  ;;  %v736_v33 = vld [vmem:[#allocation2 + $0x30] sm:$0xff] (!%p1014_p12)  ;;  %1373 = vmatprep.subr.bf16.mxu0 (!%p1014_p12), %v1693_v20  ;;  %v832_v6 = vld [vmem:[%s2024_s5] sm:$0x1] (!%p1014_p12) }
 0x29a   : > { %720 = vst [vmem:[#allocation2 + $0x50] sm:$0xff] %v704_v8  ;;  %v1226_v9 = vpop.f32.mrb[12].mxu1  ;;  %v1374_v38 = vpack.c.bf16 (!%p1014_p12), %v737_v34, %v736_v33 }
 0x29b   : > { %v707_v10 = vmax.f32 %v1226_v9, 0.0  ;;  %v675_v11 = vpop.f32.mrb[13].mxu1 }
 0x29c   : > { %v706_v12 = vmax.f32 %v675_v11, 0.0  ;;  %729 = sbr.rel (%p1014_p12) target bundleno = 1114 (0x45a), region = 68  ;;  %v739_v40 = vld [vmem:[#allocation2 + $0x48] sm:$0xff] (!%p1014_p12)  ;;  %1375 = vmatpush3.bf16.msra.mxu0 (!%p1014_p12), %v1374_v38 }
 0x29d   : > { %723 = vst [vmem:[#allocation2 + $0x68] sm:$0xff] %v707_v10  ;;  %v738_v39 = vld [vmem:[#allocation2 + $0x40] sm:$0xff] (!%p1014_p12)  ;;  %1376 = vmatprep.subr.bf16.mxu0 (!%p1014_p12), %v1693_v20 }
 0x29e   : > { %722 = vst [vmem:[#allocation2 + $0x60] sm:$0xff] %v706_v12  ;;  %v1229_v13 = vpop.f32.mrb[14].mxu1  ;;  %v1377_v44 = vpack.c.bf16 (!%p1014_p12), %v739_v40, %v738_v39 }
 0x29f   : > { %v709_v14 = vmax.f32 %v1229_v13, 0.0  ;;  %v685_v15 = vpop.f32.mrb[15].mxu1 }
 0x2a0   : > { %v708_v16 = vmax.f32 %v685_v15, 0.0  ;;  %v741_v46 = vld [vmem:[#allocation2 + $0x58] sm:$0xff] (!%p1014_p12)  ;;  %1378 = vmatpush3.bf16.msra.mxu0 (!%p1014_p12), %v1377_v44 }
 0x2a1   : > { %725 = vst [vmem:[#allocation2 + $0x78] sm:$0xff] %v709_v14  ;;  %v740_v45 = vld [vmem:[#allocation2 + $0x50] sm:$0xff] (!%p1014_p12)  ;;  %1379 = vmatprep.subr.bf16.mxu0 (!%p1014_p12), %v1693_v20 }
 0x2a2   : > { %724 = vst [vmem:[#allocation2 + $0x70] sm:$0xff] %v708_v16  ;;  %v1380_v50 = vpack.c.bf16 (!%p1014_p12), %v741_v46, %v740_v45 }
 0x2a4   : > { %v743_v52 = vld [vmem:[#allocation2 + $0x68] sm:$0xff]  ;;  %1381 = vmatpush3.bf16.msra.mxu0 %v1380_v50 }
 0x2a5   : > { %v742_v51 = vld [vmem:[#allocation2 + $0x60] sm:$0xff]  ;;  %1382 = vmatprep.subr.bf16.mxu0 %v1693_v20 }
 0x2a6   : > { %v1383_v56 = vpack.c.bf16 %v743_v52, %v742_v51 }
 0x2a8   : > { %v745_v58 = vld [vmem:[#allocation2 + $0x78] sm:$0xff]  ;;  %1384 = vmatpush3.bf16.msra.mxu0 %v1383_v56 }
 0x2a9   : > { %v744_v57 = vld [vmem:[#allocation2 + $0x70] sm:$0xff]  ;;  %1385 = vmatprep.subr.bf16.mxu0 %v1693_v20 }
 0x2aa   : > { %v1386_v62 = vpack.c.bf16 %v745_v58, %v744_v57 }
 0x2ac   : > { %1387 = vmatpush3.bf16.msra.mxu0 %v1386_v62 }
 0x2af   : > { %1263 = vmatmul.mubr.f32.vlgmr.msra.gmra.mrb[0].mxu0 %v1696_v3 }
 0x382   : > { %v812_v4 = vpop.f32.mrb[0].mxu0 }
 0x383   : > { %v1264_v5 = vpop.f32.mrb[1].mxu0  ;;  %1298 = vmatmul.mubr.f32.vlgmr.msra.gmra.mrb[0].mxu1 %v812_v4 }
 0x456   : > { %v899_v7 = vpop.f32.mrb[0].mxu1 }
 0x457   : > { %v900_v8 = vadd.f32 %v899_v7, %v832_v6  ;;  %v1299_v9 = vpop.f32.mrb[1].mxu1 }
 0x459   : > { %903 = vst [vmem:[#allocation10] sm:$0x1] %v900_v8 }
 0x45a PF: > { %p1451_p8 = scmp.eq.s32.totalorder %s1752_s25, 1  ;;  %s1697_s24 = smov [#allocation10]  }
 0x45b   : > { %s911_s16 = sshll.u32 %s1697_s24, 4  ;;  %s912_s16 = int_to_ptr.vmem [resolvable:$true] %s911_s16 }
 0x45c   : > { %s1609_s20 = scalar_lea.vmem %s912_s16, 16  ;;  %s1615_s14 = scalar_lea.vmem %s912_s16, 32 }
 0x45d   : > { %p1610_p10 = scmp.ne.s32.totalorder %s912_s16, %s1609_s20  ;;  %p1616_p9 = scmp.lt.s32.totalorder %s912_s16, %s912_s16 }
 0x45e   : > { %p1617_p1 = scmp.lt.s32.totalorder %s1615_s14, %s1609_s20 }
 0x45f   : > { %p1611_p0 = pnand %p1610_p10, %p1451_p8 }
 0x460   : > { %p1618_p3 = por %p1617_p1, %p1616_p9 }
 0x461   : > { %p1612_p5 = pneg %p1611_p0 }
 0x463   : > { %p1619_p4 = pnand %p1618_p3, %p1612_p5 }
 0x465   : > { %1622 = shalt.err (!%p1619_p4)
}
 0x466   : > { %s2052_s10 = sld [smem:[#allocation18_spill]] }
 0x46c   : > { %s1623_s18 = scalar_lea.hbm %s2052_s10, 16 }
 0x46d   : > { %p1624_p2 = scmp.ne.s32.totalorder %s2052_s10, %s1623_s18  ;;  %p1629_p11 = scmp.lt.u32.totalorder %s1623_s18, %s2052_s10 }
 0x46f   : > { %p1625_p6 = pnand %p1624_p2, %p1451_p8 }
 0x471   : > { %p1626_p7 = pneg %p1625_p6 }
 0x473   : > { %p1631_p13 = pnand %p1629_p11, %p1626_p7 }
 0x475   : > { %1634 = shalt.err (!%p1631_p13)
}
 0x476   : > { %1427 = dma.vmem_to_hbm [thread:$0]  (%p1451_p8), %s912_s16, 16, %s2052_s10, [#allocation5]  }
 0x477   : > { %1668 = dma.done.wait (%p1451_p8), [#allocation5], 16  }
 0x478   : > { %1670 = vsyncadd (%p1451_p8), [#allocation5], 4294967280 }
 0x479 PF: > { %s2053_s24 = sld [smem:[#allocation16_spill]]  ;;  %s2054_s30 = sld [smem:[#allocation17_spill]] }
 0x47a   : > { %s2055_s21 = smov %s1677_s22  ;;  %s2056_s22 = smov %s1681_s23 }
 0x47f   : > { %p16_p12 = scmp.ge.s32.totalorder %s2053_s24, 4   ;;  %s2057_s23 = smov %s2054_s30 }
 0x481   :  { %18 = sbr.rel (!%p16_p12) target bundleno = 6 (0x6), region = 103 }
 0x488   :  { %924 = vsyncpa [#allocation4], 1 }
 0x489   :  { %926 = vsyncpa [#allocation4 + $0x1], 1 }
 0x48a   :  { %927 = vsyncpa [#allocation7], 1 }
 0x48b   :  { %928 = vsyncpa [#allocation5], 1 }
 0x48c   :  { %930 = vsyncpa [#allocation5 + $0x1], 1 }

</bundles_post_ra>
